<compile_context>
chip_gen: v5e
topology: v5e:2x2
jax: 0.10.0
libtpu: 0.0.40
codegen_flags: <defaults>
</compile_context>

<pallas_src>
import math
import functools

import jax
import jax.numpy as jnp
from jax import lax
from jax.experimental import pallas as pl
from jax.experimental.pallas import tpu as pltpu


def _plan_seq_tiling(S, q_cap, kv_cap):
    """Return (tq, tk, S_pad) with sublane-aligned tiles, padding S if needed."""
    def aligned_divisor(n, cap):
        if n <= cap:
            return n                       # full-dim block is always legal
        t = (cap // 8) * 8
        while t >= 8:
            if n % t == 0:
                return t
            t -= 8
        return None

    tq = aligned_divisor(S, q_cap)
    tk = aligned_divisor(S, kv_cap)
    if tq is not None and tk is not None:
        return tq, tk, S
    base = max(8, (min(q_cap, kv_cap) // 8) * 8)
    S_pad = ((S + base - 1) // base) * base
    return base, base, S_pad


def _default_vmem_limit_bytes():
    """~75% of physical VMEM (~48 MiB on v7x, ~96 MiB on v5e/v6e)."""
    try:
        cap = int(pltpu.get_tpu_info().vmem_capacity_bytes)
    except Exception:
        cap = 64 * 1024 * 1024             # conservative fallback (v7x size)
    return int(min((cap * 3) // 4, 112 * 1024 * 1024))


def _mha_flash_kernel(q_ref, k_ref, v_ref, wo_ref, bo_ref, o_ref,
                      m_s, l_s, acc_s, oacc_s,
                      *, tk, kv_len, needs_kv_mask, mxu_dtype):
    # Grid: (batch, q_tile, head, kv_tile)
    h = pl.program_id(2)
    kv = pl.program_id(3)
    nh = pl.num_programs(2)
    nkv = pl.num_programs(3)

    # ---- start of a (batch, q_tile) block: reset the O-projection accumulator
    @pl.when((h == 0) & (kv == 0))
    def _init_out():
        oacc_s[...] = jnp.zeros_like(oacc_s)

    # ---- per-head init: reset online-softmax state --------------------------
    @pl.when(kv == 0)
    def _init_head():
        m_s[...] = jnp.full_like(m_s, -jnp.inf)
        l_s[...] = jnp.zeros_like(l_s)
        acc_s[...] = jnp.zeros_like(acc_s)

    q = q_ref[0, 0]                        # (tq, hd), pre-scaled by 1/sqrt(hd)
    k = k_ref[0, 0]                        # (tk, hd)
    v = v_ref[0, 0]                        # (tk, hd)

    # ---- online-softmax flash update (softmax math stays fp32) --------------
    s = lax.dot_general(q, k, (((1,), (1,)), ((), ())),
                        preferred_element_type=jnp.float32)       # (tq, tk)
    if needs_kv_mask:
        col = kv * tk + lax.broadcasted_iota(jnp.int32, s.shape, 1)
        s = jnp.where(col < kv_len, s, -1e30)

    m_prev = m_s[...]
    m_new = jnp.maximum(m_prev, jnp.max(s, axis=-1, keepdims=True))
    alpha = jnp.exp(m_prev - m_new)
    p = jnp.exp(s - m_new)
    l_s[...] = alpha * l_s[...] + jnp.sum(p, axis=-1, keepdims=True)
    acc_s[...] = alpha * acc_s[...] + jnp.dot(p.astype(mxu_dtype), v,
                                              preferred_element_type=jnp.float32)
    m_s[...] = m_new

    # ---- end of KV loop: normalize once (exact), fold head into the O-proj --
    @pl.when(kv == nkv - 1)
    def _fold_head():
        vals = acc_s[...] / l_s[...]                              # (tq, hd)
        oacc_s[...] += jnp.dot(vals.astype(mxu_dtype), wo_ref[h],
                               preferred_element_type=jnp.float32)

    # ---- end of head loop: add bias and store the lane-dense output tile ----
    @pl.when((h == nh - 1) & (kv == nkv - 1))
    def _store():
        o_ref[0] = (oacc_s[...] + bo_ref[...]).astype(o_ref.dtype)


def multihead_attention(x, w_qkv, b_qkv, w_o, b_o, *, num_heads,
                        mxu_dtype=jnp.bfloat16,
                        q_tile_cap=256, kv_tile_cap=256,
                        vmem_limit_bytes=None):
    """x: (B, S, D_in); w_qkv: (3E, D_in), w_o: (E, E) in torch nn.Linear layout.

    w_qkv row layout matches the module's forward rearrange: per-head
    interleaved [q | k | v] (row index h*3*hd + j*hd + d).
    """
    B, S, D_in = x.shape
    E = w_qkv.shape[0] // 3
    H = num_heads
    hd = E // H
    out_dtype = x.dtype
    scale = 1.0 / math.sqrt(hd)

    # ---- hoisted QKV projection (one XLA matmul; mxu_dtype feeds, f32 accum) -
    x_mx = jnp.asarray(x).astype(mxu_dtype)
    w_mx = jnp.asarray(w_qkv).astype(mxu_dtype)
    qkv = jnp.einsum('bsd,od->bso', x_mx, w_mx,
                     preferred_element_type=jnp.float32)
    qkv = qkv + jnp.asarray(b_qkv).astype(jnp.float32)
    qkv = qkv.reshape(B, S, H, 3, hd).transpose(0, 2, 3, 1, 4)    # (B, H, 3, S, hd)
    q = (qkv[:, :, 0] * scale).astype(mxu_dtype)                  # pre-scaled
    k = qkv[:, :, 1].astype(mxu_dtype)
    v = qkv[:, :, 2].astype(mxu_dtype)

    # ---- sequence tiling / padding -------------------------------------------
    tq, tk, S_pad = _plan_seq_tiling(S, q_tile_cap, kv_tile_cap)
    if S_pad != S:
        pad = ((0, 0), (0, 0), (0, S_pad - S), (0, 0))
        q, k, v = jnp.pad(q, pad), jnp.pad(k, pad), jnp.pad(v, pad)
    nq, nk = S_pad // tq, S_pad // tk

    # ---- VMEM-resident output-projection weight / bias -----------------------
    wo = jnp.asarray(w_o).T.reshape(H, hd, E).astype(mxu_dtype)   # (H, hd, E)
    bo = jnp.asarray(b_o).reshape(1, E).astype(jnp.float32)

    kernel = functools.partial(_mha_flash_kernel,
                               tk=tk, kv_len=S,
                               needs_kv_mask=(S_pad != S),
                               mxu_dtype=mxu_dtype)

    itm = jnp.dtype(mxu_dtype).itemsize
    out_itm = jnp.dtype(out_dtype).itemsize
    cost = pl.CostEstimate(
        flops=int(4 * B * H * S_pad * S_pad * hd        # Q K^T and P V
                  + 2 * B * S_pad * E * E),             # fused output projection
        transcendentals=int(B * H * S_pad * S_pad),     # softmax exp
        bytes_accessed=int(itm * (q.size                        # Q streamed once
                                  + nq * (k.size + v.size)      # K/V per q-tile
                                  + wo.size)                    # resident W_o
                           + 4 * bo.size
                           + out_itm * B * S_pad * E))

    if vmem_limit_bytes is None:
        vmem_limit_bytes = _default_vmem_limit_bytes()

    out = pl.pallas_call(
        kernel,
        out_shape=jax.ShapeDtypeStruct((B, S_pad, E), out_dtype),
        grid_spec=pltpu.PrefetchScalarGridSpec(
            num_scalar_prefetch=0,
            grid=(B, nq, H, nk),
            in_specs=[
                pl.BlockSpec((1, 1, tq, hd), lambda b, qi, h, kv: (b, h, qi, 0)),  # Q
                pl.BlockSpec((1, 1, tk, hd), lambda b, qi, h, kv: (b, h, kv, 0)),  # K
                pl.BlockSpec((1, 1, tk, hd), lambda b, qi, h, kv: (b, h, kv, 0)),  # V
                # W_o / b_o: full-array blocks with constant index_map => fetched
                # once and VMEM-resident; head slice selected in-kernel.
                pl.BlockSpec((H, hd, E), lambda b, qi, h, kv: (0, 0, 0)),          # W_o
                pl.BlockSpec((1, E), lambda b, qi, h, kv: (0, 0)),                 # b_o
            ],
            out_specs=pl.BlockSpec((1, tq, E), lambda b, qi, h, kv: (b, qi, 0)),
            scratch_shapes=[
                pltpu.VMEM((tq, 1), jnp.float32),   # running max m
                pltpu.VMEM((tq, 1), jnp.float32),   # running denom l
                pltpu.VMEM((tq, hd), jnp.float32),  # per-head attention accumulator
                pltpu.VMEM((tq, E), jnp.float32),   # output-projection accumulator
            ]),
        compiler_params=pltpu.CompilerParams(
            # batch & q-tile shard across TensorCores (v7x megacore);
            # head & kv-tile are accumulator/reduction axes.
            dimension_semantics=("parallel", "parallel", "arbitrary", "arbitrary"),
            vmem_limit_bytes=int(vmem_limit_bytes)),
        cost_estimate=cost,
    )(q, k, v, wo, bo)

    return out[:, :S, :] if S_pad != S else out


def _xavier_uniform(key, shape):
    # matches torch.nn.init.xavier_uniform_ for a (fan_out, fan_in) Linear weight
    fan_out, fan_in = shape
    bound = math.sqrt(6.0 / (fan_in + fan_out))
    return jax.random.uniform(key, shape, jnp.float32, -bound, bound)


def _reference(x, w_qkv, b_qkv, w_o, b_o, num_heads):
    """Pure-JAX reference reproducing the torch module exactly."""
    B, S, D_in = x.shape
    E = w_o.shape[0]
    hd = E // num_heads
    qkv = x @ w_qkv.T + b_qkv                                          # (B, S, 3E)
    qkv = qkv.reshape(B, S, num_heads, 3 * hd).transpose(0, 2, 1, 3)   # (B, H, S, 3hd)
    q, k, v = qkv[..., :hd], qkv[..., hd:2 * hd], qkv[..., 2 * hd:]
    logits = jnp.einsum('bhqd,bhkd->bhqk', q, k) / math.sqrt(hd)
    attn = jax.nn.softmax(logits, axis=-1)
    vals = jnp.einsum('bhqk,bhkd->bhqd', attn, v)
    vals = vals.transpose(0, 2, 1, 3).reshape(B, S, E)
    return vals @ w_o.T + b_o


if __name__ == "__main__":
    # Small deterministic config
    batch, seq_len = 2, 8
    input_dim, embed_dim, num_heads = 16, 32, 4

    key = jax.random.PRNGKey(0)
    kx, kqkv, ko, kb1, kb2 = jax.random.split(key, 5)

    x = jax.random.normal(kx, (batch, seq_len, input_dim), jnp.float32)

    # Parameters (torch nn.Linear layout: weight (out, in), bias (out,))
    w_qkv = _xavier_uniform(kqkv, (3 * embed_dim, input_dim))
    b_qkv = 0.1 * jax.random.normal(kb1, (3 * embed_dim,), jnp.float32)
    w_o = _xavier_uniform(ko, (embed_dim, embed_dim))
    b_o = 0.1 * jax.random.normal(kb2, (embed_dim,), jnp.float32)

    ref = _reference(x, w_qkv, b_qkv, w_o, b_o, num_heads)

    # fp32 MXU feeds: tight correctness check (exact softmax division).
    out_f32 = jax.block_until_ready(
        multihead_attention(x, w_qkv, b_qkv, w_o, b_o, num_heads=num_heads,
                            mxu_dtype=jnp.float32))
    assert out_f32.shape == (batch, seq_len, embed_dim)
    assert jnp.allclose(out_f32, ref, atol=5e-3, rtol=5e-3), "fp32 path mismatch"

    # bf16 MXU feeds (default fast path, fp32 accumulation): looser check.
    out_bf16 = jax.block_until_ready(
        multihead_attention(x, w_qkv, b_qkv, w_o, b_o, num_heads=num_heads))
    assert out_bf16.shape == (batch, seq_len, embed_dim)
    assert jnp.allclose(out_bf16, ref, atol=5e-2, rtol=5e-2), "bf16 path mismatch"

    print("KERNEL_OK")
</pallas_src>

<mosaic_0001>
module attributes {stable_mosaic.version = 11 : i64} {
  func.func @_mha_flash_kernel(%arg0: i32, %arg1: i32, %arg2: i32, %arg3: i32, %arg4: memref<1x1x8x8xf32, #tpu.memory_space<vmem>>, %arg5: memref<1x1x8x8xf32, #tpu.memory_space<vmem>>, %arg6: memref<1x1x8x8xf32, #tpu.memory_space<vmem>>, %arg7: memref<4x8x32xf32, #tpu.memory_space<vmem>>, %arg8: memref<1x32xf32, #tpu.memory_space<vmem>>, %arg9: memref<1x8x32xf32, #tpu.memory_space<vmem>>, %arg10: memref<8x1xf32, #tpu.memory_space<vmem>>, %arg11: memref<8x1xf32, #tpu.memory_space<vmem>>, %arg12: memref<8x8xf32, #tpu.memory_space<vmem>>, %arg13: memref<8x32xf32, #tpu.memory_space<vmem>>) attributes {dimension_semantics = [#tpu.dimension_semantics<parallel>, #tpu.dimension_semantics<parallel>, #tpu.dimension_semantics<arbitrary>, #tpu.dimension_semantics<arbitrary>], iteration_bounds = array<i64: 2, 1, 4, 1>, scalar_prefetch = 0 : i64, scratch_operands = 4 : i64, tpu.core_type = #tpu.core_type<tc>, window_params = [{transform_indices = @transform_0, window_bounds = array<i64: 1, 1, 8, 8>}, {transform_indices = @transform_1, window_bounds = array<i64: 1, 1, 8, 8>}, {transform_indices = @transform_2, window_bounds = array<i64: 1, 1, 8, 8>}, {pipeline_mode = #tpu.pipeline_mode<synchronous>, transform_indices = @transform_3, window_bounds = array<i64: 4, 8, 32>}, {pipeline_mode = #tpu.pipeline_mode<synchronous>, transform_indices = @transform_4, window_bounds = array<i64: 1, 32>}, {transform_indices = @transform_5, window_bounds = array<i64: 1, 8, 32>}]} {
    %c0_i32 = arith.constant 0 : i32
    %0 = arith.cmpi eq, %arg2, %c0_i32 : i32
    %c0_i32_0 = arith.constant 0 : i32
    %1 = arith.cmpi eq, %arg3, %c0_i32_0 : i32
    %2 = arith.andi %0, %1 : i1
    %3 = arith.extui %2 : i1 to i32
    %c0_i32_1 = arith.constant 0 : i32
    %4 = arith.cmpi ne, %3, %c0_i32_1 : i32
    scf.if %4 {
      %cst_34 = arith.constant 0.000000e+00 : f32
      %45 = vector.broadcast %cst_34 : f32 to vector<8x32xf32>
      %c0_35 = arith.constant 0 : index
      %c0_36 = arith.constant 0 : index
      %46 = vector.load %arg13[%c0_35, %c0_36] : memref<8x32xf32, #tpu.memory_space<vmem>>, vector<8x32xf32>
      tpu.vector_store %arg13[%c0_35, %c0_36], %45 {strides = array<i32>} : memref<8x32xf32, #tpu.memory_space<vmem>>, vector<8x32xf32>,
    } else {
    }
    %c0_i32_2 = arith.constant 0 : i32
    %5 = arith.cmpi eq, %arg3, %c0_i32_2 : i32
    %6 = arith.extui %5 : i1 to i32
    %c0_i32_3 = arith.constant 0 : i32
    %7 = arith.cmpi ne, %6, %c0_i32_3 : i32
    scf.if %7 {
      %cst_34 = arith.constant 0xFF800000 : f32
      %45 = vector.broadcast %cst_34 : f32 to vector<8x1xf32>
      %c0_35 = arith.constant 0 : index
      %c0_36 = arith.constant 0 : index
      %46 = vector.load %arg10[%c0_35, %c0_36] : memref<8x1xf32, #tpu.memory_space<vmem>>, vector<8x1xf32>
      tpu.vector_store %arg10[%c0_35, %c0_36], %45 {strides = array<i32>} : memref<8x1xf32, #tpu.memory_space<vmem>>, vector<8x1xf32>,
      %cst_37 = arith.constant 0.000000e+00 : f32
      %47 = vector.broadcast %cst_37 : f32 to vector<8x1xf32>
      %c0_38 = arith.constant 0 : index
      %c0_39 = arith.constant 0 : index
      %48 = vector.load %arg11[%c0_38, %c0_39] : memref<8x1xf32, #tpu.memory_space<vmem>>, vector<8x1xf32>
      tpu.vector_store %arg11[%c0_38, %c0_39], %47 {strides = array<i32>} : memref<8x1xf32, #tpu.memory_space<vmem>>, vector<8x1xf32>,
      %cst_40 = arith.constant 0.000000e+00 : f32
      %49 = vector.broadcast %cst_40 : f32 to vector<8x8xf32>
      %c0_41 = arith.constant 0 : index
      %c0_42 = arith.constant 0 : index
      %50 = vector.load %arg12[%c0_41, %c0_42] : memref<8x8xf32, #tpu.memory_space<vmem>>, vector<8x8xf32>
      tpu.vector_store %arg12[%c0_41, %c0_42], %49 {strides = array<i32>} : memref<8x8xf32, #tpu.memory_space<vmem>>, vector<8x8xf32>,
    } else {
    }
    %c0 = arith.constant 0 : index
    %c0_4 = arith.constant 0 : index
    %c0_5 = arith.constant 0 : index
    %c0_6 = arith.constant 0 : index
    %8 = vector.load %arg4[%c0, %c0_4, %c0_5, %c0_6] : memref<1x1x8x8xf32, #tpu.memory_space<vmem>>, vector<1x1x8x8xf32>
    %9 = vector.shape_cast %8 : vector<1x1x8x8xf32> to vector<8x8xf32>
    %c0_7 = arith.constant 0 : index
    %c0_8 = arith.constant 0 : index
    %c0_9 = arith.constant 0 : index
    %c0_10 = arith.constant 0 : index
    %10 = vector.load %arg5[%c0_7, %c0_8, %c0_9, %c0_10] : memref<1x1x8x8xf32, #tpu.memory_space<vmem>>, vector<1x1x8x8xf32>
    %11 = vector.shape_cast %10 : vector<1x1x8x8xf32> to vector<8x8xf32>
    %c0_11 = arith.constant 0 : index
    %c0_12 = arith.constant 0 : index
    %c0_13 = arith.constant 0 : index
    %c0_14 = arith.constant 0 : index
    %12 = vector.load %arg6[%c0_11, %c0_12, %c0_13, %c0_14] : memref<1x1x8x8xf32, #tpu.memory_space<vmem>>, vector<1x1x8x8xf32>
    %13 = vector.shape_cast %12 : vector<1x1x8x8xf32> to vector<8x8xf32>
    %cst = arith.constant dense<0.000000e+00> : vector<8x8xf32>
    %14 = tpu.matmul %9, %11, %cst {dimension_numbers = #tpu.dot_dimension_numbers<[1], [1], [0], [0], [0, 0, 1, 0], [], []>} : vector<8x8xf32>, vector<8x8xf32>, vector<8x8xf32> -> vector<8x8xf32>
    %c0_15 = arith.constant 0 : index
    %c0_16 = arith.constant 0 : index
    %15 = vector.load %arg10[%c0_15, %c0_16] : memref<8x1xf32, #tpu.memory_space<vmem>>, vector<8x1xf32>
    %cst_17 = arith.constant dense<0xFF800000> : vector<8xf32>
    %16 = vector.multi_reduction <maximumf>, %14, %cst_17 [1] : vector<8x8xf32> to vector<8xf32>
    %17 = vector.shape_cast %16 : vector<8xf32> to vector<8x1xf32>
    %18 = arith.maximumf %15, %17 : vector<8x1xf32>
    %19 = arith.subf %15, %18 : vector<8x1xf32>
    %20 = math.exp %19 : vector<8x1xf32>
    %21 = vector.broadcast %18 : vector<8x1xf32> to vector<8x8xf32>
    %22 = arith.subf %14, %21 : vector<8x8xf32>
    %23 = math.exp %22 : vector<8x8xf32>
    %c0_18 = arith.constant 0 : index
    %c0_19 = arith.constant 0 : index
    %24 = vector.load %arg11[%c0_18, %c0_19] : memref<8x1xf32, #tpu.memory_space<vmem>>, vector<8x1xf32>
    %25 = arith.mulf %20, %24 : vector<8x1xf32>
    %cst_20 = arith.constant dense<0.000000e+00> : vector<8xf32>
    %26 = vector.multi_reduction <add>, %23, %cst_20 [1] : vector<8x8xf32> to vector<8xf32>
    %27 = vector.shape_cast %26 : vector<8xf32> to vector<8x1xf32>
    %28 = arith.addf %25, %27 : vector<8x1xf32>
    %c0_21 = arith.constant 0 : index
    %c0_22 = arith.constant 0 : index
    %29 = vector.load %arg11[%c0_21, %c0_22] : memref<8x1xf32, #tpu.memory_space<vmem>>, vector<8x1xf32>
    tpu.vector_store %arg11[%c0_21, %c0_22], %28 {strides = array<i32>} : memref<8x1xf32, #tpu.memory_space<vmem>>, vector<8x1xf32>,
    %c0_23 = arith.constant 0 : index
    %c0_24 = arith.constant 0 : index
    %30 = vector.load %arg12[%c0_23, %c0_24] : memref<8x8xf32, #tpu.memory_space<vmem>>, vector<8x8xf32>
    %31 = vector.broadcast %20 : vector<8x1xf32> to vector<8x8xf32>
    %32 = arith.mulf %31, %30 : vector<8x8xf32>
    %cst_25 = arith.constant dense<0.000000e+00> : vector<8x8xf32>
    %33 = tpu.matmul %23, %13, %cst_25 {dimension_numbers = #tpu.dot_dimension_numbers<[1], [0], [0], [1], [0, 0, 1, 1], [], []>} : vector<8x8xf32>, vector<8x8xf32>, vector<8x8xf32> -> vector<8x8xf32>
    %34 = arith.addf %32, %33 : vector<8x8xf32>
    %c0_26 = arith.constant 0 : index
    %c0_27 = arith.constant 0 : index
    %35 = vector.load %arg12[%c0_26, %c0_27] : memref<8x8xf32, #tpu.memory_space<vmem>>, vector<8x8xf32>
    tpu.vector_store %arg12[%c0_26, %c0_27], %34 {strides = array<i32>} : memref<8x8xf32, #tpu.memory_space<vmem>>, vector<8x8xf32>,
    %c0_28 = arith.constant 0 : index
    %c0_29 = arith.constant 0 : index
    %36 = vector.load %arg10[%c0_28, %c0_29] : memref<8x1xf32, #tpu.memory_space<vmem>>, vector<8x1xf32>
    tpu.vector_store %arg10[%c0_28, %c0_29], %18 {strides = array<i32>} : memref<8x1xf32, #tpu.memory_space<vmem>>, vector<8x1xf32>,
    %c0_i32_30 = arith.constant 0 : i32
    %37 = arith.cmpi eq, %arg3, %c0_i32_30 : i32
    %38 = arith.extui %37 : i1 to i32
    %c0_i32_31 = arith.constant 0 : i32
    %39 = arith.cmpi ne, %38, %c0_i32_31 : i32
    scf.if %39 {
      %c0_34 = arith.constant 0 : index
      %c0_35 = arith.constant 0 : index
      %45 = vector.load %arg12[%c0_34, %c0_35] : memref<8x8xf32, #tpu.memory_space<vmem>>, vector<8x8xf32>
      %c0_36 = arith.constant 0 : index
      %c0_37 = arith.constant 0 : index
      %46 = vector.load %arg11[%c0_36, %c0_37] : memref<8x1xf32, #tpu.memory_space<vmem>>, vector<8x1xf32>
      %47 = vector.broadcast %46 : vector<8x1xf32> to vector<8x8xf32>
      %48 = arith.divf %45, %47 : vector<8x8xf32>
      %c0_38 = arith.constant 0 : index
      %c0_39 = arith.constant 0 : index
      %49 = vector.load %arg13[%c0_38, %c0_39] : memref<8x32xf32, #tpu.memory_space<vmem>>, vector<8x32xf32>
      %50 = arith.index_cast %arg2 : i32 to index
      %c0_40 = arith.constant 0 : index
      %c0_41 = arith.constant 0 : index
      %51 = vector.load %arg7[%50, %c0_40, %c0_41] : memref<4x8x32xf32, #tpu.memory_space<vmem>>, vector<1x8x32xf32>
      %52 = vector.shape_cast %51 : vector<1x8x32xf32> to vector<8x32xf32>
      %cst_42 = arith.constant dense<0.000000e+00> : vector<8x32xf32>
      %53 = tpu.matmul %48, %52, %cst_42 {dimension_numbers = #tpu.dot_dimension_numbers<[1], [0], [0], [1], [0, 0, 1, 1], [], []>} : vector<8x8xf32>, vector<8x32xf32>, vector<8x32xf32> -> vector<8x32xf32>
      %54 = arith.addf %49, %53 : vector<8x32xf32>
      %c0_43 = arith.constant 0 : index
      %c0_44 = arith.constant 0 : index
      %55 = vector.load %arg13[%c0_43, %c0_44] : memref<8x32xf32, #tpu.memory_space<vmem>>, vector<8x32xf32>
      tpu.vector_store %arg13[%c0_43, %c0_44], %54 {strides = array<i32>} : memref<8x32xf32, #tpu.memory_space<vmem>>, vector<8x32xf32>,
    } else {
    }
    %c3_i32 = arith.constant 3 : i32
    %40 = arith.cmpi eq, %arg2, %c3_i32 : i32
    %c0_i32_32 = arith.constant 0 : i32
    %41 = arith.cmpi eq, %arg3, %c0_i32_32 : i32
    %42 = arith.andi %40, %41 : i1
    %43 = arith.extui %42 : i1 to i32
    %c0_i32_33 = arith.constant 0 : i32
    %44 = arith.cmpi ne, %43, %c0_i32_33 : i32
    scf.if %44 {
      %c0_34 = arith.constant 0 : index
      %c0_35 = arith.constant 0 : index
      %45 = vector.load %arg13[%c0_34, %c0_35] : memref<8x32xf32, #tpu.memory_space<vmem>>, vector<8x32xf32>
      %c0_36 = arith.constant 0 : index
      %c0_37 = arith.constant 0 : index
      %46 = vector.load %arg8[%c0_36, %c0_37] : memref<1x32xf32, #tpu.memory_space<vmem>>, vector<1x32xf32>
      %47 = vector.broadcast %46 : vector<1x32xf32> to vector<8x32xf32>
      %48 = arith.addf %45, %47 : vector<8x32xf32>
      %c0_38 = arith.constant 0 : index
      %c0_39 = arith.constant 0 : index
      %c0_40 = arith.constant 0 : index
      %49 = vector.load %arg9[%c0_38, %c0_39, %c0_40] : memref<1x8x32xf32, #tpu.memory_space<vmem>>, vector<1x8x32xf32>
      %50 = vector.shape_cast %49 : vector<1x8x32xf32> to vector<8x32xf32>
      %51 = vector.shape_cast %48 : vector<8x32xf32> to vector<1x8x32xf32>
      tpu.vector_store %arg9[%c0_38, %c0_39, %c0_40], %51 {strides = array<i32>} : memref<1x8x32xf32, #tpu.memory_space<vmem>>, vector<1x8x32xf32>,
    } else {
    }
    return
  }
  func.func @transform_0(%arg0: i32, %arg1: i32, %arg2: i32, %arg3: i32) -> (i32, i32, i32, i32) {
    %c0_i32 = arith.constant 0 : i32
    %c0_i32_0 = arith.constant 0 : i32
    return %arg0, %arg2, %arg1, %c0_i32 : i32, i32, i32, i32
  }
  func.func @transform_1(%arg0: i32, %arg1: i32, %arg2: i32, %arg3: i32) -> (i32, i32, i32, i32) {
    %c0_i32 = arith.constant 0 : i32
    %c0_i32_0 = arith.constant 0 : i32
    return %arg0, %arg2, %arg3, %c0_i32 : i32, i32, i32, i32
  }
  func.func @transform_2(%arg0: i32, %arg1: i32, %arg2: i32, %arg3: i32) -> (i32, i32, i32, i32) {
    %c0_i32 = arith.constant 0 : i32
    %c0_i32_0 = arith.constant 0 : i32
    return %arg0, %arg2, %arg3, %c0_i32 : i32, i32, i32, i32
  }
  func.func @transform_3(%arg0: i32, %arg1: i32, %arg2: i32, %arg3: i32) -> (i32, i32, i32) {
    %c0_i32 = arith.constant 0 : i32
    %c0_i32_0 = arith.constant 0 : i32
    %c0_i32_1 = arith.constant 0 : i32
    %c0_i32_2 = arith.constant 0 : i32
    return %c0_i32, %c0_i32_0, %c0_i32_1 : i32, i32, i32
  }
  func.func @transform_4(%arg0: i32, %arg1: i32, %arg2: i32, %arg3: i32) -> (i32, i32) {
    %c0_i32 = arith.constant 0 : i32
    %c0_i32_0 = arith.constant 0 : i32
    %c0_i32_1 = arith.constant 0 : i32
    return %c0_i32, %c0_i32_0 : i32, i32
  }
  func.func @transform_5(%arg0: i32, %arg1: i32, %arg2: i32, %arg3: i32) -> (i32, i32, i32) {
    %c0_i32 = arith.constant 0 : i32
    %c0_i32_0 = arith.constant 0 : i32
    return %arg0, %arg1, %c0_i32 : i32, i32, i32
  }
}

</mosaic_0001>

<bundles_post_ra>
// kernel: tpu_custom_call.1
= control target key start
LH: loop header
LB: loop body
LE: loop exit
PB: predicated region body
PF: predicated region fallthrough
CT: control target
= control target key end

     0   :  { %s1455_s0 = inlined_call_operand.hbm [shape: f32[2,4,8,8], index: 0, kind: input, shape index: {}]   ;;  %s1456_s1 = inlined_call_operand.hbm [shape: f32[2,4,8,8], index: 1, kind: input, shape index: {}]   ;;  %s1457_s2 = inlined_call_operand.hbm [shape: f32[2,4,8,8], index: 2, kind: input, shape index: {}]   ;;  %s1458_s3 = inlined_call_operand.hbm [shape: f32[4,8,32], index: 3, kind: input, shape index: {}]   ;;  %s1459_s4 = inlined_call_operand.vmem [shape: f32[1,32], index: 4, kind: input, shape index: {}]   ;;  %s1460_s5 = inlined_call_operand.hbm [shape: f32[2,8,32], index: 5, kind: output, shape index: {}]  }
   0x1   :  { %1472 = sst [smem:[#allocation29_spill]] %s1456_s1 }
   0x2   :  { %1473 = sst [smem:[#allocation30_spill]] %s1458_s3 }
   0x3   :  { %1474 = sst [smem:[#allocation31_spill]] %s1460_s5 }
   0x4   :  { %10 = vsyncpa [#allocation7], 0 }
   0x5   :  { %12 = vsyncpa [#allocation7 + $0x1], 0 }
   0x6   :  { %13 = vsyncpa [#allocation10], 0 }
   0x7   :  { %15 = vsyncpa [#allocation10 + $0x1], 0 }
   0x8   :  { %16 = vsyncpa [#allocation13], 0 }
   0x9   :  { %17 = vsyncpa [#allocation8], 0 }
   0xa   :  { %19 = vsyncpa [#allocation8 + $0x1], 0  ;;  %s1184_s18 = smov 0   ;;  %s1186_s19 = smov 0  }
   0xb   :  { %s1188_s20 = smov 0   ;;  %s1190_s21 = smov 0  }
   0xc   :  { %s1192_s22 = smov 0   ;;  %s1194_s23 = smov 0  }
   0xd   :  { %s1196_s24 = smov 0   ;;  %s1198_s25 = smov 0  }
   0xe   :  { %s1200_s26 = smov 0   ;;  %s1202_s27 = smov 0  }
   0xf   :  { %s1204_s28 = smov 0  }
  0x10 LB: > { %1475 = sst [smem:[#allocation19_spill]] %s1105_s18  ;;  %s43_s29 = sadd.s32 1, %s1137_s26  ;;  %s1145_s28 = sphi %s1204_s28, %s25_s28   ;;  %s1141_s27 = sphi %s1202_s27, %s1504_s27   ;;  %s1137_s26 = sphi %s1200_s26, %s1503_s26   ;;  %s1133_s25 = sphi %s1198_s25, %s1502_s25   ;;  %s1129_s24 = sphi %s1196_s24, %s1501_s24   ;;  %s1125_s23 = sphi %s1194_s23, %s1509_s23   ;;  %s1121_s22 = sphi %s1192_s22, %s1508_s22   ;;  %s1117_s21 = sphi %s1190_s21, %s1507_s21   ;;  %s1113_s20 = sphi %s1188_s20, %s1499_s20   ;;  %s1109_s19 = sphi %s1186_s19, %s1506_s19   ;;  %s1105_s18 = sphi %s1184_s18, %s1505_s18  }
  0x11   : > { %1476 = sst [smem:[#allocation20_spill]] %s1113_s20  ;;  %s51_s30 = sadd.s32 1, %s1141_s27 }
  0x12   : > { %1477 = sst [smem:[#allocation21_spill]] %s1137_s26  ;;  %p45_p0 = scmp.ge.s32.totalorder %s43_s29, 4 }
  0x13   : > { %1478 = sst [smem:[#allocation22_spill]] %s1141_s27  ;;  %s62_s6 = sadd.s32 1, %s1125_s23 }
  0x14   : > { %1479 = sst [smem:[#allocation23_spill]] %s1145_s28  ;;  %p69_p1 = scmp.ne.s32.totalorder %s1125_s23, %s1121_s22 }
  0x15   : > { %p70_p2 = scmp.eq.s32.totalorder %s1145_s28, 0  ;;  %s1511_s29 = smov (%p45_p0, %s43_s29), 0 }
  0x16   : > { %1480 = sst [smem:[#allocation24_spill]] %s1511_s29  ;;  %s1513_s30 = smov (!%p45_p0, %s51_s30), %s1141_s27 }
  0x17   : > { %s56_s7 = ssub.s32 %s1137_s26, %s1511_s29  ;;  %p1250_p3 = por %p70_p2, %p69_p1 }
  0x18   : > { %p53_p4 = scmp.ge.s32.totalorder %s1513_s30, 2  ;;  %p75_p5 = scmp.ne.s32.totalorder %s1121_s22, %s1117_s21 }
  0x19   : > { %s192_s9 = sadd.s32 1, %s1113_s20  ;;  %p787_p6 = scmp.lt.s32.totalorder %s1145_s28, 8 }
  0x1a   : > { %s1515_s30 = smov (%p53_p4, %s1513_s30), 0  ;;  %s1462_s10 = sand.u32 1, %s1125_s23  }
  0x1b   : > { %1482 = sst [smem:[#allocation25_spill]] %s1515_s30  ;;  %s55_s11 = ssub.s32 %s1141_s27, %s1515_s30 }
  0x1c   : > { %s1265_s12 = sshll.u32 %s1462_s10, 3  ;;  %s57_s13 = sor.u32 %s56_s7, %s55_s11 }
  0x1d   : > { %p190_p7 = scmp.eq.s32.totalorder %s55_s11, 0  ;;  %p60_p8 = scmp.eq.s32.totalorder %s57_s13, 0 }
  0x1e   : > { %s729_s14 = sshll.u32 %s1141_s27, 2  ;;  %p1277_p9 = pnand %p787_p6, %p1250_p3 }
  0x1f   : > { %s1269_s15 = scalar_select %p190_p7, %s1113_s20, %s192_s9  }
  0x20   : > { %s1272_s16 = scalar_select %p60_p8, %s1125_s23, %s62_s6  }
  0x21   : > { %1483 = sst [smem:[#allocation26_spill]] %s1269_s15  ;;  %s255_s17 = sadd.s32 %s1137_s26, %s729_s14 }
  0x22   : > { %1484 = sst [smem:[#allocation27_spill]] %s1272_s16  ;;  %s1281_s7 = sshll.u32 %s255_s17, 3 }
  0x23   : > { %s268_s9 = sand.u32 1, %s1145_s28   ;;  %s1486_s1 = sld [smem:[#allocation29_spill]] }
  0x24   : > { %s272_s8 = scalar_lea.vmem [#allocation9], %s1265_s12  ;;  %s1289_s29 = scalar_lea.sflag [#allocation10], %s268_s9 }
  0x25   : > { %s283_s14 = sshll.u32 %s272_s8, 4  ;;  %s1295_s17 = sadd.s32 4294967295, %s1145_s28   ;;  %s284_s14 = int_to_ptr.vmem [resolvable:$true] %s283_s14 }
  0x26   : > { %s724_s27 = sadd.s32 4294967294, %s1145_s28   ;;  %p76_p10 = scmp.eq.s32.totalorder %s1295_s17, 0 }
  0x27   : > { %p202_p11 = scmp.ne.s32.totalorder %s1113_s20, %s1109_s19  ;;  %p203_p12 = scmp.eq.s32.totalorder %s1295_s17, 7 }
  0x28   : > { %p208_p13 = scmp.ne.s32.totalorder %s1109_s19, %s1105_s18  ;;  %p1309_p0 = por %p76_p10, %p75_p5 }
  0x29   : > { %s279_s13 = scalar_lea.hbm %s1486_s1, %s1281_s7  ;;  %p209_p1 = scmp.eq.s32.totalorder %s724_s27, 7 }
  0x2a   : > { %s281_s10 = sshll.u32 %s279_s13, 4  ;;  %p1313_p2 = por %p203_p12, %p202_p11  ;;  %s282_s10 = int_to_ptr.hbm [resolvable:$true] %s281_s10 }
  0x2b   : > { %778 = dma.hbm_to_vmem [thread:$0]  (!%p1277_p9), %s282_s10, 128, %s284_s14, %s1289_s29  }
  0x2c   : > { %p725_p3 = scmp.ge.s32.totalorder %s1145_s28, 1  ;;  %p1318_p4 = por %p209_p1, %p208_p13 }
  0x2d   : > { %p216_p6 = scmp.lt.s32.totalorder %s1145_s28, 9  ;;  %s1491_s3 = sld [smem:[#allocation30_spill]] }
  0x2e   : > { %s1489_s11 = scalar_select %p1318_p4, 1, 0 }
  0x2f   : > { %p1326_p5 = pnand %p725_p3, %p216_p6  ;;  %s1147_s27 = smov [#allocation12]  }
  0x30   : > { %1490 = sst [smem:[#allocation28_spill]] %s1489_s11  ;;  %s229_s14 = sshll.u32 %s1147_s27, 4  ;;  %s230_s14 = int_to_ptr.vmem [resolvable:$true] %s229_s14 }
  0x31   : > { %p768_p7 = pneg %p1326_p5  ;;  %s257_s13 = scalar_lea.hbm %s1455_s0, %s1281_s7 }
  0x32   : > { %s1148_s26 = smov 128   ;;  %s1149_s16 = smov 8  }
  0x33   : > { %s227_s21 = sshll.u32 %s1491_s3, 4  ;;  %p769_p8 = pnand %p768_p7, %p76_p10  ;;  %s228_s21 = int_to_ptr.hbm [resolvable:$true] %s227_s21 }
  0x34   : > { %s259_s3 = sshll.u32 %s257_s13, 4  ;;  %s250_s15 = scalar_lea.vmem [#allocation6], %s1265_s12  ;;  %s260_s3 = int_to_ptr.hbm [resolvable:$true] %s259_s3 }
  0x35   : > { %771 = dma.hbm_to_vmem [thread:$0]  (!%p769_p8), %s228_s21, 512, %s230_s14, [#allocation13], %s1148_s26, %s1148_s26, %s1149_s16  }
  0x36   : > { %s261_s20 = sshll.u32 %s250_s15, 4  ;;  %s1493_s11 = sand.u32 1, %s1125_s23   ;;  %s262_s20 = int_to_ptr.vmem [resolvable:$true] %s261_s20 }
  0x37   : > { %s247_s18 = scalar_lea.sflag [#allocation7], %s1493_s11  ;;  %s301_s5 = scalar_lea.hbm %s1457_s2, %s1281_s7 }
  0x38   : > { %775 = dma.hbm_to_vmem [thread:$0]  (!%p1277_p9), %s260_s3, 128, %s262_s20, %s247_s18  }
  0x39   : > { %s294_s1 = scalar_lea.vmem [#allocation11], %s1265_s12  ;;  %s303_s13 = sshll.u32 %s301_s5, 4  ;;  %s304_s13 = int_to_ptr.hbm [resolvable:$true] %s303_s13 }
  0x3a   : > { %s305_s6 = sshll.u32 %s294_s1, 4  ;;  %314 = sbr.rel (%p1326_p5) target bundleno = 877 (0x36d), region = 40  ;;  %s306_s6 = int_to_ptr.vmem [resolvable:$true] %s305_s6 }
  0x3b   : > { %781 = dma.hbm_to_vmem [thread:$0]  (!%p1277_p9), %s304_s13, 128, %s306_s6, %s1289_s29  }
  0x3c   : > { %s316_s26 = sand.u32 (!%p1326_p5), 1, %s1121_s22  }
  0x3d   : > { %s1354_s15 = sshll.u32 (!%p1326_p5), %s316_s26, 3  ;;  %s317_s3 = scalar_lea.sflag (!%p1326_p5), [#allocation7], %s316_s26 }
  0x3e   : > { %s320_s18 = scalar_lea.vmem (!%p1326_p5), [#allocation6], %s1354_s15 }
  0x3f   : > { %1088 = dma.done.wait (%p1309_p0), %s317_s3, 128  }
  0x40   : > { %1090 = vsyncadd (%p1309_p0), %s317_s3, 4294967168  ;;  %s326_s5 = sand.u32 1, %s1295_s17   ;;  %s330_s28 = scalar_lea.vmem [#allocation9], %s1354_s15 }
  0x41   : > { %s327_s20 = scalar_lea.sflag [#allocation10], %s326_s5 }
  0x42   : > { %1092 = dma.done.wait (%p1309_p0), %s327_s20, 256  }
  0x43   : > { %1094 = vsyncadd (%p1309_p0), %s327_s20, 4294967040  ;;  %s340_s29 = scalar_lea.vmem [#allocation11], %s1354_s15 }
  0x44   : > { %1096 = dma.done.wait (%p76_p10), [#allocation13], 512  }
  0x45   : > { %1098 = vsyncadd (%p76_p10), [#allocation13], 4294966784  ;;  %s380_s30 = sand.u32 1, %s1109_s19   ;;  %p383_p9 = scmp.eq.s32.totalorder %s1129_s24, 0 }
  0x46   : > { %s1376_s12 = sshll.u32 %s380_s30, 3  ;;  %vm389_vm0 = vcmask (%p383_p9), 261120   ;;  %v1150_v0 = vmov (%p383_p9), 0.0  }
  0x47   : > { %s382_s16 = scalar_lea.vmem [#allocation14], %s1376_s12  ;;  %388 = sbr.rel (!%p383_p9) target bundleno = 76 (0x4c), region = 60  ;;  %390 = vst.msk [vmem:[#allocation5] sm:$0xff] (%p383_p9), %vm389_vm0, %v1150_v0 }
  0x4c PF: > { %vm397_vm1 = vcmask 64512   ;;  %v400_v1 = vld [vmem:[%s330_s28] sm:$0xff]  ;;  %v1151_v2 = vmov 0.0   ;;  %v399_v3 = vld [vmem:[%s320_s18] sm:$0xff]  ;;  %vm394_vm2 = vcmask 7168   ;;  %v1152_v6 = vmov -inf  }
  0x4d   : > { %398 = vst.msk [vmem:[#allocation4] sm:$0xff] %vm397_vm1, %v1151_v2  ;;  %744 = vmatpush.xpose.msk.msra.mxu0 %vm397_vm1, %v400_v1  ;;  %v1153_v7 = vmov 0   ;;  %v401_v14 = vld [vmem:[%s340_s29] sm:$0xff]  ;;  %s747_s7 = sshll.u32 %s1129_s24, 3  ;;  %p541_p10 = scmp.eq.s32.totalorder %s1129_s24, 3  ;;  %vm539_vm7 = vcmask 261120  }
  0x4e   : > { %395 = vst.msk [vmem:[#allocation2] sm:$0xff] %vm394_vm2, %v1152_v6  ;;  %885 = vset.pattern.permute.xlu0 %v1153_v7  ;;  %887 = vset.pattern.permute.xlu2 %v1153_v7  ;;  %s513_s17 = scalar_lea.vmem [#allocation12], %s747_s7  ;;  %v511_v44 = vld [vmem:[#allocation5] sm:$0xff]  ;;  %v894_v48 = vld [vmem:[%s1459_s4] ss:$0 sm:$0xff] (%p541_p10) }
  0x4f   : > { %396 = vst.msk [vmem:[#allocation3] sm:$0xff] %vm394_vm2, %v1151_v2  ;;  %886 = vset.pattern.permute.xlu1 %v1153_v7  ;;  %478 = vmatpush.msra.mxu1 %v401_v14  ;;  %v514_v30 = vld [vmem:[%s513_s17] sm:$0xff] }
  0x50   : > { %745 = vmatmul.msk.f32.vlgmr.msra.gmra.mxu0 %vm397_vm1, %v399_v3  ;;  %533 = vmatpush.msra.mxu2 %v514_v30 }
  0x54   : > { %v453_v24 = vld [vmem:[#allocation4] sm:$0xff] }
  0x55   : > { %v429_v8 = vld [vmem:[#allocation2] sm:$0xff] }
  0x56   : > { %v445_v20 = vld [vmem:[#allocation3] sm:$0xff] }
  0xcd   : > { %v426_v4 = vpop.f32.mrf.mxu0 }
  0xce   : > { %v430_v5 = vsel %vm397_vm1, %v426_v4, -inf }
  0xcf   : > { %431 = vmax.xlane.f32.xlu0 %v430_v5 }
 0x142   : > { %v432_v9 = vpop.xlane.xlu0 %431 }
 0x143   : > { %v433_v10 = vmax.f32 %v429_v8, %v432_v9 }
 0x145   : > { %v434_v11 = vsub.f32 %v429_v8, %v433_v10  ;;  %485 = vst.msk [vmem:[#allocation2] sm:$0xff] %vm394_vm2, %v433_v10  ;;  %439 = vperm.xlu0 %885, %v433_v10  }
 0x147   : > { %v435_v12 = vmul.f32 1.442695, %v434_v11 }
 0x149   : > { %888 = vpow2.f32 %v435_v12 }
 0x14f   : > { %v889_v13 = vpop.eup %888 }
 0x150   : > { %456 = vperm.xlu2 %887, %v889_v13   ;;  %v446_v21 = vmul.f32 %v889_v13, %v445_v20 }
 0x1aa   : > { %v457_v25 = vpop.permute.xlu2 %456 }
 0x1ab   : > { %v459_v26 = vmul.f32 %v457_v25, %v453_v24 }
 0x1b7   : > { %v440_v15 = vpop.permute.xlu0 %439 }
 0x1b8   : > { %v442_v16 = vsub.f32 %v426_v4, %v440_v15 }
 0x1ba   : > { %v443_v17 = vmul.f32 1.442695, %v442_v16 }
 0x1bc   : > { %890 = vpow2.f32 %v443_v17 }
 0x1c2   : > { %v891_v18 = vpop.eup %890 }
 0x1c3   : > { %746 = vmatmul.msk.f32.vlgmr.msra.gmra.mxu1 %vm397_vm1, %v891_v18  ;;  %v447_v19 = vsel %vm397_vm1, %v891_v18, 0.0 }
 0x1c4   : > { %448 = vadd.xlane.f32.xlu1 %v447_v19 }
 0x237   : > { %v449_v22 = vpop.xlane.xlu1 %448 }
 0x238   : > { %v450_v23 = vadd.f32 %v449_v22, %v446_v21 }
 0x23a   : > { %452 = vst.msk [vmem:[#allocation3] sm:$0xff] %vm394_vm2, %v450_v23 }
 0x240   : > { %v480_v27 = vpop.f32.mrf.mxu1 }
 0x241   : > { %v483_v28 = vadd.f32 %v480_v27, %v459_v26  ;;  %v490_v29 = vld [vmem:[#allocation3] sm:$0xff] }
 0x242   : > { %493 = vperm.xlu1 %886, %v490_v29  }
 0x243   : > { %484 = vst.msk [vmem:[#allocation4] sm:$0xff] %vm397_vm1, %v483_v28 }
 0x24a   : > { %v489_v41 = vld [vmem:[#allocation4] sm:$0xff] }
 0x2b4   : > { %v494_v31 = vpop.permute.xlu1 %493 }
 0x2b5   : > { %892 = vrcp.f32 %v494_v31  ;;  %v507_v35 = vand.u32 2147483648, %v494_v31  ;;  %v505_v37 = vand.u32 2147483647, %v494_v31  ;;  %vm501_vm4 = vweird.f32 %v494_v31 }
 0x2b7   : > { %v508_v39 = vor.u32 1.1754944e-38, %v507_v35  ;;  %vm506_vm6 = vcmp.eq.f32.partialorder %v505_v37, 8.507059e+37 }
 0x2bb   : > { %v893_v32 = vpop.eup %892 }
 0x2bc   : > { %v497_v33 = vmul.f32 %v893_v32, %v494_v31  ;;  %vm502_vm3 = vweird.f32 %v893_v32 }
 0x2bd   : > { %vm503_vm5 = vmor %vm501_vm4, %vm502_vm3 }
 0x2be   : > { %v498_v34 = vsub.f32 1.0, %v497_v33 }
 0x2c0   : > { %v499_v36 = vmul.f32 %v893_v32, %v498_v34 }
 0x2c2   : > { %v500_v38 = vadd.f32 %v893_v32, %v499_v36 }
 0x2c4   : > { %v504_v40 = vsel %vm503_vm5, %v893_v32, %v500_v38 }
 0x2c5   : > { %v509_v42 = vsel %vm506_vm6, %v508_v39, %v504_v40 }
 0x2c6   : > { %v510_v43 = vmul.f32 %v509_v42, %v489_v41 }
 0x2c8   : > { %748 = vmatmul.msk.f32.vlgmr.msra.gmra.mxu2 %vm397_vm1, %v510_v43 }
 0x34a   : > { %545 = sbr.rel (!%p541_p10) target bundleno = 857 (0x359), region = 72 }
 0x34b   : > { %v535_v45 = vpop.f32.mrf.mxu2 }
 0x34c   : > { %v538_v46 = vadd.f32 %v535_v45, %v511_v44 }
 0x34e   : > { %540 = vst.msk [vmem:[#allocation5] sm:$0xff] %vm539_vm7, %v538_v46 }
 0x355   : > { %v546_v47 = vld [vmem:[#allocation5] sm:$0xff] }
 0x356   : > { %v551_v49 = vadd.f32 %v894_v48, %v546_v47 }
 0x358   : > { %553 = vst.msk [vmem:[%s382_s16] sm:$0xff] %vm539_vm7, %v551_v49 }
 0x359 PF: > { %s751_s24 = sshll.u32 %s1133_s25, 3  ;;  %s1494_s14 = sld [smem:[#allocation31_spill]] }
 0x35a   : > { %s568_s1 = sshll.u32 %s382_s16, 4  ;;  %s555_s13 = scalar_lea.sflag [#allocation8], %s380_s30  ;;  %s569_s1 = int_to_ptr.vmem [resolvable:$true] %s568_s1 }
 0x35f   : > { %s566_s27 = scalar_lea.hbm %s1494_s14, %s751_s24  ;;  %s1035_s18 = scalar_lea.hbm %s1494_s14, 16 }
 0x360   : > { %s570_s6 = sshll.u32 %s566_s27, 4  ;;  %s571_s6 = int_to_ptr.hbm [resolvable:$true] %s570_s6 }
 0x361   : > { %s1029_s26 = sshra.s32 %s571_s6, 4  ;;  %s1030_s26 = int_to_ptr.hbm [resolvable:$true] %s1029_s26 }
 0x362   : > { %s1031_s15 = scalar_lea.hbm %s1030_s26, 8  ;;  %p1036_p0 = scmp.lt.s32.totalorder %s1030_s26, %s1494_s14 }
 0x363   : > { %p1032_p11 = scmp.ne.s32.totalorder %s1030_s26, %s1031_s15  ;;  %p1037_p1 = scmp.lt.s32.totalorder %s1035_s18, %s1031_s15 }
 0x365   : > { %p1033_p12 = pnand %p1032_p11, %p1313_p2  ;;  %p1038_p3 = por %p1037_p1, %p1036_p0 }
 0x367   : > { %p1034_p13 = pneg %p1033_p12 }
 0x369   : > { %p1039_p6 = pnand %p1038_p3, %p1034_p13 }
 0x36b   : > { %1042 = shalt.err (!%p1039_p6)
}
 0x36c   : > { %766 = dma.vmem_to_hbm [thread:$0]  (%p1313_p2), %s569_s1, 128, %s571_s6, %s555_s13  }
 0x36d PF: > { %s1495_s28 = sld [smem:[#allocation23_spill]] }
 0x36e   : > { %s1496_s29 = sld [smem:[#allocation19_spill]] }
 0x373   : > { %p789_p5 = scmp.ge.s32.totalorder %s1495_s28, 2 }
 0x374   : > { %s582_s12 = sand.u32 1, %s1496_s29  }
 0x375   : > { %p783_p7 = pnand %p789_p5, %p1318_p4  ;;  %s583_s16 = scalar_lea.sflag [#allocation8], %s582_s12 }
 0x377   : > { %p784_p8 = pneg %p783_p7 }
 0x379   : > { %1100 = dma.done.wait (%p784_p8), %s583_s16, 128  }
 0x37a   : > { %1102 = vsyncadd (%p784_p8), %s583_s16, 4294967168  ;;  %s25_s28 = sadd.s32 1, %s1495_s28   ;;  %s1498_s7 = sld [smem:[#allocation20_spill]] }
 0x37b   : > { %p22_p9 = scmp.ge.s32.totalorder %s25_s28, 10   ;;  %s1499_s20 = sld [smem:[#allocation26_spill]] }
 0x37c   : > { %s1500_s10 = sld [smem:[#allocation27_spill]]  ;;  %s1505_s18 = smov %s1109_s19 }
 0x37d   : > { %s1501_s24 = sld [smem:[#allocation21_spill]]  ;;  %s1507_s21 = smov %s1121_s22 }
 0x37e   : > { %s1502_s25 = sld [smem:[#allocation22_spill]]  ;;  %s1508_s22 = smov %s1125_s23 }
 0x37f   : > { %s1503_s26 = sld [smem:[#allocation24_spill]]  ;;  %24 = sbr.rel (!%p22_p9) target bundleno = 16 (0x10), region = 130 }
 0x380   : > { %s1504_s27 = sld [smem:[#allocation25_spill]]  ;;  %s1506_s19 = smov %s1498_s7 }
 0x382   : > { %s1509_s23 = smov %s1500_s10 }
 0x384   :  { %589 = vsyncpa [#allocation7], 1 }
 0x385   :  { %591 = vsyncpa [#allocation7 + $0x1], 1 }
 0x386   :  { %592 = vsyncpa [#allocation10], 1 }
 0x387   :  { %594 = vsyncpa [#allocation10 + $0x1], 1 }
 0x388   :  { %595 = vsyncpa [#allocation13], 1 }
 0x389   :  { %596 = vsyncpa [#allocation8], 1 }
 0x38a   :  { %598 = vsyncpa [#allocation8 + $0x1], 1 }

</bundles_post_ra>
